<compile_context>
chip_gen: v7x
topology: tpu7x:2x2x1
jax: 0.10.0
libtpu: 0.0.40
codegen_flags: <defaults>
</compile_context>

<pallas_src>
import jax
import jax.numpy as jnp
from jax.experimental import pallas as pl
from jax.experimental.pallas import tpu as pltpu


def linear_add_kernel(x_ref, w_ref, other_ref, o_ref):
    # x_ref:     (Cin,  1, R, L)  VMEM  channel-major activations, one batch slice
    # w_ref:     (Cout*Cin,)      SMEM  flattened torch Linear weight (row-major)
    # other_ref: (Cout, R, L)     VMEM  unscaled `other` for this seq tile
    # o_ref:     (Cout, 1, R, L)  VMEM
    cin = x_ref.shape[0]
    cout = other_ref.shape[0]
    for e in range(cout):  # static Python ints -> fully unrolled VPU code
        acc = w_ref[e * cin].astype(jnp.float32) * x_ref[0, 0].astype(jnp.float32)
        for c in range(1, cin):
            acc = acc + w_ref[e * cin + c].astype(jnp.float32) * x_ref[c, 0].astype(jnp.float32)
        acc = acc + other_ref[e].astype(jnp.float32) * 0.5
        o_ref[e, 0] = acc.astype(o_ref.dtype)


def _pick_tile(S):
    """Pick (L, R_total, R): lane width L, rows per batch R_total = S // L,
    and rows per block R (multiple of 8 when possible, ~64K elems per plane)."""
    L = S
    for cand in (1024, 512, 256, 128):
        if S % cand == 0:
            L = cand
            break
    R_total = S // L

    R = R_total  # legal fallback: block dim equals the full array dim
    cand_r = max(((64 * 1024) // L // 8) * 8, 8)
    while cand_r >= 8:
        if R_total % cand_r == 0:
            R = cand_r
            break
        cand_r -= 8
    return L, R_total, R


def model_forward(x, w, other):
    """x: (B, S, Cin); w: (Cout, Cin) [torch Linear layout]; other: (S, Cout)."""
    B, S, Cin = x.shape
    Cout = w.shape[0]

    L, R_total, R = _pick_tile(S)
    num_row_tiles = R_total // R

    # Channel-major, sublane/lane-dense layouts (wrapper-side layout plumbing).
    x_cm = jnp.transpose(x, (2, 0, 1)).reshape(Cin, B, R_total, L)
    other_cm = other.T.reshape(Cout, R_total, L)   # NOT broadcast over batch
    w_flat = w.reshape(-1)

    # Batch is the innermost grid dim so `other`'s block index is constant
    # across it (fetched once per seq tile); both axes are independent.
    grid = (num_row_tiles, B)

    out_cm = pl.pallas_call(
        linear_add_kernel,
        out_shape=jax.ShapeDtypeStruct((Cout, B, R_total, L), x.dtype),
        grid_spec=pl.GridSpec(
            grid=grid,
            in_specs=[
                pl.BlockSpec((Cin, 1, R, L), lambda j, b: (0, b, j, 0)),
                # Tiny flattened weight lives in SMEM, read as scalars.
                pl.BlockSpec(memory_space=pltpu.MemorySpace.SMEM),
                pl.BlockSpec((Cout, R, L), lambda j, b: (0, j, 0)),
            ],
            out_specs=pl.BlockSpec((Cout, 1, R, L), lambda j, b: (0, b, j, 0)),
        ),
        compiler_params=pltpu.CompilerParams(
            dimension_semantics=("parallel", "parallel"),
        ),
    )(x_cm, w_flat, other_cm)

    return jnp.transpose(out_cm.reshape(Cout, B, S), (1, 2, 0))


if __name__ == "__main__":
    # Small shapes consistent with the forward pass: Linear(3 -> 2) on the last dim.
    B, S, Cin, Cout = 2, 128, 3, 2

    key = jax.random.PRNGKey(0)
    kx, kw, ko = jax.random.split(key, 3)

    x1 = jax.random.normal(kx, (B, S, Cin), dtype=jnp.float32)

    # torch.nn.Linear weight layout is (Cout, Cin).
    w = jax.random.normal(kw, (Cout, Cin), dtype=jnp.float32) * (1.0 / jnp.sqrt(Cin))

    # `other` passed to __init__; the module stores other.unsqueeze(0) * 0.5
    # (the 0.5 scale is applied inside the kernel).
    other = jax.random.normal(ko, (S, Cout), dtype=jnp.float32)

    out = model_forward(x1, w, other)
    out = jax.block_until_ready(out)

    # Pure-JAX reference check.
    ref = jnp.einsum("bsc,ec->bse", x1, w) + (other * 0.5)[None, :, :]
    assert out.shape == (B, S, Cout)
    assert jnp.allclose(out, ref, atol=1e-5, rtol=1e-5)

    print("KERNEL_OK")
</pallas_src>

<mosaic_0001>
module attributes {stable_mosaic.version = 11 : i64} {
  func.func @linear_add_kernel(%arg0: i32, %arg1: i32, %arg2: memref<3x1x1x128xf32, #tpu.memory_space<vmem>>, %arg3: memref<6xf32, #tpu.memory_space<smem>>, %arg4: memref<2x1x128xf32, #tpu.memory_space<vmem>>, %arg5: memref<2x1x1x128xf32, #tpu.memory_space<vmem>>) attributes {dimension_semantics = [#tpu.dimension_semantics<parallel>, #tpu.dimension_semantics<parallel>], iteration_bounds = array<i64: 1, 2>, scalar_prefetch = 0 : i64, scratch_operands = 0 : i64, tpu.core_type = #tpu.core_type<tc>, window_params = [{transform_indices = @transform_0, window_bounds = array<i64: 3, 1, 1, 128>}, {transform_indices = @transform_1, window_bounds = array<i64: 6>}, {transform_indices = @transform_2, window_bounds = array<i64: 2, 1, 128>}, {transform_indices = @transform_3, window_bounds = array<i64: 2, 1, 1, 128>}]} {
    %c0 = arith.constant 0 : index
    %0 = memref.load %arg3[%c0] : memref<6xf32, #tpu.memory_space<smem>>
    %c0_0 = arith.constant 0 : index
    %c0_1 = arith.constant 0 : index
    %c0_2 = arith.constant 0 : index
    %c0_3 = arith.constant 0 : index
    %1 = vector.load %arg2[%c0_0, %c0_1, %c0_2, %c0_3] : memref<3x1x1x128xf32, #tpu.memory_space<vmem>>, vector<1x1x1x128xf32>
    %2 = vector.shape_cast %1 : vector<1x1x1x128xf32> to vector<1x128xf32>
    %3 = vector.broadcast %0 : f32 to vector<1x128xf32>
    %4 = arith.mulf %3, %2 : vector<1x128xf32>
    %c1 = arith.constant 1 : index
    %5 = memref.load %arg3[%c1] : memref<6xf32, #tpu.memory_space<smem>>
    %c1_4 = arith.constant 1 : index
    %c0_5 = arith.constant 0 : index
    %c0_6 = arith.constant 0 : index
    %c0_7 = arith.constant 0 : index
    %6 = vector.load %arg2[%c1_4, %c0_5, %c0_6, %c0_7] : memref<3x1x1x128xf32, #tpu.memory_space<vmem>>, vector<1x1x1x128xf32>
    %7 = vector.shape_cast %6 : vector<1x1x1x128xf32> to vector<1x128xf32>
    %8 = vector.broadcast %5 : f32 to vector<1x128xf32>
    %9 = arith.mulf %8, %7 : vector<1x128xf32>
    %10 = arith.addf %4, %9 : vector<1x128xf32>
    %c2 = arith.constant 2 : index
    %11 = memref.load %arg3[%c2] : memref<6xf32, #tpu.memory_space<smem>>
    %c2_8 = arith.constant 2 : index
    %c0_9 = arith.constant 0 : index
    %c0_10 = arith.constant 0 : index
    %c0_11 = arith.constant 0 : index
    %12 = vector.load %arg2[%c2_8, %c0_9, %c0_10, %c0_11] : memref<3x1x1x128xf32, #tpu.memory_space<vmem>>, vector<1x1x1x128xf32>
    %13 = vector.shape_cast %12 : vector<1x1x1x128xf32> to vector<1x128xf32>
    %14 = vector.broadcast %11 : f32 to vector<1x128xf32>
    %15 = arith.mulf %14, %13 : vector<1x128xf32>
    %16 = arith.addf %10, %15 : vector<1x128xf32>
    %c0_12 = arith.constant 0 : index
    %c0_13 = arith.constant 0 : index
    %c0_14 = arith.constant 0 : index
    %17 = vector.load %arg4[%c0_12, %c0_13, %c0_14] : memref<2x1x128xf32, #tpu.memory_space<vmem>>, vector<1x1x128xf32>
    %18 = vector.shape_cast %17 : vector<1x1x128xf32> to vector<1x128xf32>
    %cst = arith.constant 5.000000e-01 : f32
    %19 = vector.broadcast %cst : f32 to vector<1x128xf32>
    %20 = arith.mulf %18, %19 : vector<1x128xf32>
    %21 = arith.addf %16, %20 : vector<1x128xf32>
    %c0_15 = arith.constant 0 : index
    %c0_16 = arith.constant 0 : index
    %c0_17 = arith.constant 0 : index
    %c0_18 = arith.constant 0 : index
    %22 = vector.load %arg5[%c0_15, %c0_16, %c0_17, %c0_18] : memref<2x1x1x128xf32, #tpu.memory_space<vmem>>, vector<1x1x1x128xf32>
    %23 = vector.shape_cast %22 : vector<1x1x1x128xf32> to vector<1x128xf32>
    %24 = vector.shape_cast %21 : vector<1x128xf32> to vector<1x1x1x128xf32>
    tpu.vector_store %arg5[%c0_15, %c0_16, %c0_17, %c0_18], %24 {strides = array<i32>} : memref<2x1x1x128xf32, #tpu.memory_space<vmem>>, vector<1x1x1x128xf32>,
    %c3 = arith.constant 3 : index
    %25 = memref.load %arg3[%c3] : memref<6xf32, #tpu.memory_space<smem>>
    %c0_19 = arith.constant 0 : index
    %c0_20 = arith.constant 0 : index
    %c0_21 = arith.constant 0 : index
    %c0_22 = arith.constant 0 : index
    %26 = vector.load %arg2[%c0_19, %c0_20, %c0_21, %c0_22] : memref<3x1x1x128xf32, #tpu.memory_space<vmem>>, vector<1x1x1x128xf32>
    %27 = vector.shape_cast %26 : vector<1x1x1x128xf32> to vector<1x128xf32>
    %28 = vector.broadcast %25 : f32 to vector<1x128xf32>
    %29 = arith.mulf %28, %27 : vector<1x128xf32>
    %c4 = arith.constant 4 : index
    %30 = memref.load %arg3[%c4] : memref<6xf32, #tpu.memory_space<smem>>
    %c1_23 = arith.constant 1 : index
    %c0_24 = arith.constant 0 : index
    %c0_25 = arith.constant 0 : index
    %c0_26 = arith.constant 0 : index
    %31 = vector.load %arg2[%c1_23, %c0_24, %c0_25, %c0_26] : memref<3x1x1x128xf32, #tpu.memory_space<vmem>>, vector<1x1x1x128xf32>
    %32 = vector.shape_cast %31 : vector<1x1x1x128xf32> to vector<1x128xf32>
    %33 = vector.broadcast %30 : f32 to vector<1x128xf32>
    %34 = arith.mulf %33, %32 : vector<1x128xf32>
    %35 = arith.addf %29, %34 : vector<1x128xf32>
    %c5 = arith.constant 5 : index
    %36 = memref.load %arg3[%c5] : memref<6xf32, #tpu.memory_space<smem>>
    %c2_27 = arith.constant 2 : index
    %c0_28 = arith.constant 0 : index
    %c0_29 = arith.constant 0 : index
    %c0_30 = arith.constant 0 : index
    %37 = vector.load %arg2[%c2_27, %c0_28, %c0_29, %c0_30] : memref<3x1x1x128xf32, #tpu.memory_space<vmem>>, vector<1x1x1x128xf32>
    %38 = vector.shape_cast %37 : vector<1x1x1x128xf32> to vector<1x128xf32>
    %39 = vector.broadcast %36 : f32 to vector<1x128xf32>
    %40 = arith.mulf %39, %38 : vector<1x128xf32>
    %41 = arith.addf %35, %40 : vector<1x128xf32>
    %c1_31 = arith.constant 1 : index
    %c0_32 = arith.constant 0 : index
    %c0_33 = arith.constant 0 : index
    %42 = vector.load %arg4[%c1_31, %c0_32, %c0_33] : memref<2x1x128xf32, #tpu.memory_space<vmem>>, vector<1x1x128xf32>
    %43 = vector.shape_cast %42 : vector<1x1x128xf32> to vector<1x128xf32>
    %cst_34 = arith.constant 5.000000e-01 : f32
    %44 = vector.broadcast %cst_34 : f32 to vector<1x128xf32>
    %45 = arith.mulf %43, %44 : vector<1x128xf32>
    %46 = arith.addf %41, %45 : vector<1x128xf32>
    %c1_35 = arith.constant 1 : index
    %c0_36 = arith.constant 0 : index
    %c0_37 = arith.constant 0 : index
    %c0_38 = arith.constant 0 : index
    %47 = vector.load %arg5[%c1_35, %c0_36, %c0_37, %c0_38] : memref<2x1x1x128xf32, #tpu.memory_space<vmem>>, vector<1x1x1x128xf32>
    %48 = vector.shape_cast %47 : vector<1x1x1x128xf32> to vector<1x128xf32>
    %49 = vector.shape_cast %46 : vector<1x128xf32> to vector<1x1x1x128xf32>
    tpu.vector_store %arg5[%c1_35, %c0_36, %c0_37, %c0_38], %49 {strides = array<i32>} : memref<2x1x1x128xf32, #tpu.memory_space<vmem>>, vector<1x1x1x128xf32>,
    return
  }
  func.func @transform_0(%arg0: i32, %arg1: i32) -> (i32, i32, i32, i32) {
    %c0_i32 = arith.constant 0 : i32
    %c0_i32_0 = arith.constant 0 : i32
    %c0_i32_1 = arith.constant 0 : i32
    return %c0_i32, %arg1, %arg0, %c0_i32_0 : i32, i32, i32, i32
  }
  func.func @transform_1(%arg0: i32, %arg1: i32) -> i32 {
    %c0_i32 = arith.constant 0 : i32
    %c0_i32_0 = arith.constant 0 : i32
    return %c0_i32 : i32
  }
  func.func @transform_2(%arg0: i32, %arg1: i32) -> (i32, i32, i32) {
    %c0_i32 = arith.constant 0 : i32
    %c0_i32_0 = arith.constant 0 : i32
    %c0_i32_1 = arith.constant 0 : i32
    return %c0_i32, %arg0, %c0_i32_0 : i32, i32, i32
  }
  func.func @transform_3(%arg0: i32, %arg1: i32) -> (i32, i32, i32, i32) {
    %c0_i32 = arith.constant 0 : i32
    %c0_i32_0 = arith.constant 0 : i32
    %c0_i32_1 = arith.constant 0 : i32
    return %c0_i32, %arg1, %arg0, %c0_i32_0 : i32, i32, i32, i32
  }
}

</mosaic_0001>

<bundles_post_ra>
// kernel: tpu_custom_call.1
= control target key start
LH: loop header
LB: loop body
LE: loop exit
PB: predicated region body
PF: predicated region fallthrough
CT: control target
= control target key end

     0   :  { %8 = vsyncpa [#allocation3], 0  ;;  %s881_s0 = inlined_call_operand.hbm [shape: f32[3,2,1,128], index: 0, kind: input, shape index: {}]   ;;  %s882_s1 = inlined_call_operand.vmem [shape: f32[6], index: 1, kind: input, shape index: {}]   ;;  %s883_s2 = inlined_call_operand.vmem [shape: f32[2,1,128], index: 2, kind: input, shape index: {}]   ;;  %s884_s3 = inlined_call_operand.hbm [shape: f32[2,2,1,128], index: 3, kind: output, shape index: {}]  }
   0x1   :  { %10 = vsyncpa [#allocation3 + $0x1], 0 }
   0x2   :  { %11 = vsyncpa [#allocation5], 0 }
   0x3   :  { %12 = vsyncpa [#allocation4], 0 }
   0x4   :  { %14 = vsyncpa [#allocation4 + $0x1], 0  ;;  %s662_s12 = smov 0   ;;  %s664_s13 = smov 0  }
   0x5   :  { %s666_s14 = smov 0   ;;  %s668_s15 = smov 0  }
   0x6   :  { %s670_s16 = smov 0   ;;  %s672_s17 = smov 0  }
   0x7 LB: > { %s394_s18 = sadd.s32 4294967295, %s631_s17   ;;  %s395_s19 = sadd.s32 4294967294, %s631_s17   ;;  %s631_s17 = sphi %s672_s17, %s20_s17   ;;  %s627_s16 = sphi %s670_s16, %s907_s16   ;;  %s623_s15 = sphi %s668_s15, %s906_s15   ;;  %s619_s14 = sphi %s666_s14, %s905_s14   ;;  %s615_s13 = sphi %s664_s13, %s904_s13   ;;  %s611_s12 = sphi %s662_s12, %s903_s12  }
   0x8   : > { %s41_s20 = sadd.s32 1, %s619_s14  ;;  %p48_p0 = scmp.ne.s32.totalorder %s619_s14, %s615_s13 }
   0x9   : > { %p49_p1 = scmp.eq.s32.totalorder %s631_s17, 0  ;;  %p54_p2 = scmp.ne.s32.totalorder %s615_s13, %s611_s12 }
   0xa   : > { %p700_p3 = scmp.eq.s32.totalorder %s394_s18, 0  ;;  %p127_p4 = scmp.eq.s32.totalorder %s394_s18, 1 }
   0xb   : > { %p704_p5 = por %p49_p1, %p48_p0  ;;  %p133_p6 = scmp.eq.s32.totalorder %s395_s19, 1 }
   0xc   : > { %s889_s21 = scalar_select %p700_p3, 1, 0 }
   0xd   : > { %p710_p7 = por %p700_p3, %p54_p2  ;;  %p714_p8 = por %p127_p4, %p48_p0 }
   0xe   : > { %p718_p9 = por %p133_p6, %p54_p2  ;;  %p396_p10 = scmp.ge.s32.totalorder %s631_s17, 1 }
   0xf   : > { %s891_s23 = scalar_select %p710_p7, 1, 0 }
  0x10   : > { %s892_s24 = scalar_select %p714_p8, 1, 0 }
  0x11   : > { %s893_s25 = scalar_select %p718_p9, 1, 0 }
  0x12   : > { %p140_p11 = scmp.lt.s32.totalorder %s631_s17, 3  ;;  %s153_s28 = sshll.u32 %s882_s1, 4  ;;  %s154_s28 = int_to_ptr.vmem [resolvable:$true] %s153_s28 }
  0x13   : > { %p442_p0 = scmp.lt.s32.totalorder %s631_s17, 2  ;;  %s29_s5 = sadd.s32 1, %s627_s16 }
  0x14   : > { %p727_p12 = pnand %p396_p10, %p140_p11  ;;  %p748_p6 = scmp.ge.s32.totalorder %s29_s5, 2 }
  0x15   : > { %p737_p2 = pnand %p442_p0, %p704_p5  ;;  %s170_s7 = sand.u32 1, %s619_s14  }
  0x16   : > { %p429_p1 = pneg %p727_p12  ;;  %s500_s8 = scalar_lea.vmem %s154_s28, 16 }
  0x17   : > { %p501_p10 = scmp.ne.s32.totalorder %s154_s28, %s500_s8  ;;  %p508_p13 = scmp.lt.s32.totalorder %s154_s28, %s154_s28 }
  0x18   : > { %p743_p4 = pnand %p429_p1, %p700_p3  ;;  %p509_p9 = scmp.lt.s32.totalorder %s500_s8, %s500_s8 }
  0x1a   : > { %p502_p11 = pneg %p743_p4  ;;  %p510_p8 = por %p509_p9, %p508_p13 }
  0x1c   : > { %p503_p5 = pnand %p502_p11, %p501_p10 }
  0x1e   : > { %p504_p0 = pneg %p503_p5 }
  0x20   : > { %p511_p1 = pnand %p510_p8, %p504_p0 }
  0x22   : > { %514 = shalt.err (!%p511_p1)
}
  0x23   : > { %s633_s9 = smov [#allocation6]   ;;  %s909_s5 = smov (%p748_p6, %s29_s5), 0 }
  0x24   : > { %432 = dma.vmem_to_smem (!%p743_p4), %s154_s28, 16, %s633_s9, [#allocation5]  }
  0x25   : > { %s419_s10 = smul.u32 3, %s170_s7  ;;  %s36_s11 = ssub.s32 %s627_s16, %s909_s5 }
  0x26   : > { %s400_s18 = sshll.u32 %s627_s16, 4  ;;  %p39_p8 = scmp.eq.s32.totalorder %s36_s11, 0 }
  0x27   : > { %s767_s26 = scalar_lea.hbm %s881_s0, %s400_s18  ;;  %s174_s27 = scalar_lea.vmem [#allocation2], %s419_s10 }
  0x28   : > { %s181_s4 = sshll.u32 %s174_s27, 4  ;;  %s776_s6 = scalar_lea.sflag [#allocation3], %s170_s7  ;;  %s774_s4 = int_to_ptr.vmem [resolvable:$true] %s181_s4 }
  0x29   : > { %s772_s28 = scalar_select %p39_p8, %s619_s14, %s41_s20  }
  0x2a   : > { %s515_s8 = scalar_lea.hbm %s767_s26, 48  ;;  %p517_p13 = pneg %p737_p2 }
  0x2b   : > { %p516_p9 = scmp.ne.s32.totalorder %s767_s26, %s515_s8  ;;  %s520_s10 = scalar_lea.hbm %s881_s0, 96 }
  0x2c   : > { %p521_p10 = scmp.lt.u32.totalorder %s767_s26, %s881_s0  ;;  %p522_p11 = scmp.lt.u32.totalorder %s520_s10, %s515_s8 }
  0x2d   : > { %p518_p4 = pnand %p517_p13, %p516_p9  ;;  %p524_p0 = scmp.lt.u32.totalorder %s515_s8, %s767_s26 }
  0x2e   : > { %p523_p5 = por %p522_p11, %p521_p10 }
  0x2f   : > { %p519_p6 = pneg %p518_p4 }
  0x30   : > { %p525_p1 = por %p524_p0, %p523_p5 }
  0x32   : > { %p526_p8 = pnand %p525_p1, %p519_p6 }
  0x34   : > { %529 = shalt.err (!%p526_p8)
}
  0x35   : > { %s530_s20 = scalar_lea.vmem %s774_s4, 48  ;;  %s634_s7 = smov [#allocation2]  }
  0x36   : > { %p531_p9 = scmp.ne.s32.totalorder %s774_s4, %s530_s20  ;;  %s535_s22 = sshll.u32 %s634_s7, 4  ;;  %s536_s22 = int_to_ptr.vmem [resolvable:$false] %s535_s22 }
  0x37   : > { %s537_s27 = scalar_lea.vmem %s536_s22, 96  ;;  %p538_p7 = scmp.lt.s32.totalorder %s774_s4, %s536_s22 }
  0x38   : > { %p533_p4 = pnand %p531_p9, %p517_p13  ;;  %p539_p10 = scmp.lt.s32.totalorder %s537_s27, %s530_s20 }
  0x3a   : > { %p534_p3 = pneg %p533_p4  ;;  %p540_p11 = por %p539_p10, %p538_p7 }
  0x3c   : > { %p541_p5 = pnand %p540_p11, %p534_p3 }
  0x3e   : > { %544 = shalt.err (!%p541_p5)
}
  0x3f   : > { %s635_s8 = smov 32   ;;  %s636_s9 = smov 16  }
  0x40   : > { %s637_s11 = smov 1   ;;  %193 = sbr.rel (%p727_p12) target bundleno = 110 (0x6e), region = 32 }
  0x41   : > { %436 = dma.hbm_to_vmem [thread:$0]  (!%p737_p2), %s767_s26, 48, %s774_s4, %s776_s6, %s635_s8, %s636_s9, %s637_s11  }
  0x42   : > { %s807_s10 = sand.u32 (!%p727_p12), 1, %s615_s13   ;;  %p898_p3 = scmp.ne.s32.totalorder (!%p727_p12), %s891_s23, 0 }
  0x43   : > { %s420_s18 = smul.u32 (!%p727_p12), 3, %s807_s10  ;;  %s196_s19 = scalar_lea.sflag (!%p727_p12), [#allocation3], %s807_s10 }
  0x45   : > { %s199_s20 = scalar_lea.vmem (!%p727_p12), [#allocation2], %s420_s18 }
  0x47   : > { %598 = dma.done.wait (%p898_p3), %s196_s19, 48  }
  0x48   : > { %600 = vsyncadd (%p898_p3), %s196_s19, 4294967248  ;;  %p899_p7 = scmp.ne.s32.totalorder %s889_s21, 0 }
  0x4a   : > { %602 = dma.done.wait (%p899_p7), [#allocation5], 16  }
  0x4b   : > { %604 = vsyncadd (%p899_p7), [#allocation5], 4294967280 }
  0x4c   : > { %208 = sfence }
  0x4d   : > { %s233_s29 = sld [smem:[#allocation6]]  ;;  %s404_s30 = sld [smem:[#allocation6 + $0x1]]  ;;  %v234_v0 = vld [vmem:[%s199_s20] sm:$0x1]  ;;  %v405_v1 = vld [vmem:[%s199_s20 + $0x1] sm:$0x1] }
  0x4e   : > { %s406_s26 = sld [smem:[#allocation6 + $0x2]]  ;;  %s408_s4 = sld [smem:[#allocation6 + $0x3]]  ;;  %v407_v3 = vld [vmem:[%s199_s20 + $0x2] sm:$0x1]  ;;  %v249_v6 = vld [vmem:[%s883_s2] sm:$0x1] }
  0x4f   : > { %s409_s6 = sld [smem:[#allocation6 + $0x4]]  ;;  %s411_s7 = sld [smem:[#allocation6 + $0x5]]  ;;  %v254_v7 = vld [vmem:[%s199_s20] sm:$0x1]  ;;  %v410_v10 = vld [vmem:[%s199_s20 + $0x1] sm:$0x1] }
  0x50   : > { %s403_s22 = sshll.u32 %s807_s10, 1  ;;  %v412_v13 = vld [vmem:[%s199_s20 + $0x2] sm:$0x1]  ;;  %v250_v15 = vmul.f32 0.5, %v249_v6  ;;  %v413_v18 = vld [vmem:[%s883_s2 + $0x1] sm:$0x1] }
  0x51   : > { %s229_s9 = scalar_lea.vmem [#allocation7], %s403_s22  ;;  %v269_v24 = vmul.f32 0.5, %v413_v18  ;;  %s416_s18 = sshll.u32 %s623_s15, 4 }
  0x52   : > { %s287_s11 = sshll.u32 %s229_s9, 4  ;;  %p900_p2 = scmp.ne.s32.totalorder %s892_s24, 0  ;;  %s827_s11 = int_to_ptr.vmem [resolvable:$true] %s287_s11 }
  0x53   : > { %v235_v2 = vstv %s233_s29  ;;  %v240_v5 = vstv %s404_s30  ;;  %s832_s29 = scalar_lea.hbm %s884_s3, %s416_s18  ;;  %s274_s30 = scalar_lea.sflag [#allocation4], %s807_s10 }
  0x54   : > { %v236_v4 = vmul.f32 %v235_v2, %v234_v0  ;;  %v241_v8 = vmul.f32 %v405_v1, %v240_v5  ;;  %v246_v9 = vstv %s406_s26  ;;  %v255_v12 = vstv %s408_s4  ;;  %s545_s26 = scalar_lea.vmem %s827_s11, 32  ;;  %s638_s15 = smov [#allocation7]  }
  0x55   : > { %v247_v11 = vmul.f32 %v407_v3, %v246_v9  ;;  %v256_v16 = vmul.f32 %v255_v12, %v254_v7  ;;  %v259_v17 = vstv %s409_s6  ;;  %v264_v20 = vstv %s411_s7  ;;  %p546_p12 = scmp.ne.s32.totalorder %s827_s11, %s545_s26  ;;  %s549_s4 = sshll.u32 %s638_s15, 4  ;;  %s550_s4 = int_to_ptr.vmem [resolvable:$false] %s549_s4 }
  0x56   : > { %v242_v14 = vadd.f32 %v241_v8, %v236_v4  ;;  %v260_v19 = vmul.f32 %v410_v10, %v259_v17  ;;  %v265_v22 = vmul.f32 %v412_v13, %v264_v20  ;;  %s551_s6 = scalar_lea.vmem %s550_s4, 64  ;;  %p552_p0 = scmp.lt.s32.totalorder %s827_s11, %s550_s4 }
  0x57   : > { %p547_p13 = pnand %p546_p12, %p900_p2  ;;  %p553_p1 = scmp.lt.s32.totalorder %s551_s6, %s545_s26 }
  0x58   : > { %v248_v21 = vadd.f32 %v247_v11, %v242_v14  ;;  %v261_v23 = vadd.f32 %v260_v19, %v256_v16 }
  0x59   : > { %p548_p6 = pneg %p547_p13  ;;  %p554_p8 = por %p553_p1, %p552_p0 }
  0x5a   : > { %v251_v25 = vadd.f32 %v250_v15, %v248_v21  ;;  %v266_v26 = vadd.f32 %v265_v22, %v261_v23 }
  0x5b   : > { %p555_p9 = pnand %p554_p8, %p548_p6 }
  0x5c   : > { %252 = vst [vmem:[%s229_s9] sm:$0x1] %v251_v25  ;;  %v270_v27 = vadd.f32 %v269_v24, %v266_v26 }
  0x5e   : > { %414 = vst [vmem:[%s229_s9 + $0x1] sm:$0x1] %v270_v27 }
  0x5f   : > { %558 = shalt.err (!%p555_p9)
}
  0x60   : > { %s559_s7 = scalar_lea.hbm %s832_s29, 32  ;;  %s563_s27 = scalar_lea.hbm %s884_s3, 64 }
  0x61   : > { %p560_p4 = scmp.ne.s32.totalorder %s832_s29, %s559_s7  ;;  %p564_p5 = scmp.lt.u32.totalorder %s832_s29, %s884_s3 }
  0x62   : > { %p565_p3 = scmp.lt.u32.totalorder %s563_s27, %s559_s7  ;;  %p567_p12 = scmp.lt.u32.totalorder %s559_s7, %s832_s29 }
  0x63   : > { %p561_p10 = pnand %p560_p4, %p900_p2 }
  0x64   : > { %p566_p7 = por %p565_p3, %p564_p5 }
  0x65   : > { %p562_p11 = pneg %p561_p10 }
  0x66   : > { %p568_p13 = por %p567_p12, %p566_p7 }
  0x68   : > { %p569_p6 = pnand %p568_p13, %p562_p11 }
  0x6a   : > { %572 = shalt.err (!%p569_p6)
}
  0x6b   : > { %s639_s9 = smov 16   ;;  %s640_s18 = smov 32  }
  0x6c   : > { %s641_s19 = smov 1  }
  0x6d   : > { %427 = dma.vmem_to_hbm [thread:$0]  (%p900_p2), %s827_s11, 32, %s832_s29, %s274_s30, %s639_s9, %s640_s18, %s641_s19  }
  0x6e PF: > { %s302_s20 = sand.u32 1, %s611_s12   ;;  %p901_p0 = scmp.ne.s32.totalorder %s893_s25, 0 }
  0x6f   : > { %p902_p1 = scmp.ge.s32.totalorder %s631_s17, 2  ;;  %s303_s26 = scalar_lea.sflag [#allocation4], %s302_s20 }
  0x71   : > { %p438_p8 = pnand %p902_p1, %p901_p0 }
  0x73   : > { %606 = dma.done.wait (!%p438_p8), %s303_s26, 32  }
  0x74   : > { %608 = vsyncadd (!%p438_p8), %s303_s26, 4294967264  ;;  %s20_s17 = sadd.s32 1, %s631_s17   ;;  %s903_s12 = smov %s615_s13 }
  0x75   : > { %p17_p9 = scmp.ge.s32.totalorder %s20_s17, 4   ;;  %s904_s13 = smov %s619_s14 }
  0x76   : > { %s905_s14 = smov %s772_s28  ;;  %s906_s15 = smov %s627_s16 }
  0x77   : > { %s907_s16 = smov %s909_s5  ;;  %19 = sbr.rel (!%p17_p9) target bundleno = 7 (0x7), region = 89 }
  0x7e   :  { %308 = vsyncpa [#allocation3], 1 }
  0x7f   :  { %310 = vsyncpa [#allocation3 + $0x1], 1 }
  0x80   :  { %311 = vsyncpa [#allocation4], 1 }
  0x81   :  { %313 = vsyncpa [#allocation4 + $0x1], 1 }
  0x82   :  { %314 = vsyncpa [#allocation5], 1 }
  0x83   :  { %316 = vsyncpa [#allocation5 + $0x1], 1 }

</bundles_post_ra>
